<compile_context>
chip_gen: v6e
topology: v6e:2x2x1
jax: 0.10.0
libtpu: 0.0.40
codegen_flags: <defaults>
</compile_context>

<pallas_src>
import jax
import jax.numpy as jnp
from jax.experimental import pallas as pl
from jax.experimental.pallas import tpu as pltpu


def _dma_copy_kernel(x_hbm, o_hbm, sem):
    # One DMA for the whole array: HBM -> HBM, no VMEM round-trip.
    cp = pltpu.make_async_copy(x_hbm, o_hbm, sem)
    cp.start()
    cp.wait()


def _materialized_copy(x):
    """Exact copy of `x` via a single raw HBM->HBM async DMA (no grid)."""
    return pl.pallas_call(
        _dma_copy_kernel,
        out_shape=jax.ShapeDtypeStruct(x.shape, x.dtype),
        in_specs=[pl.BlockSpec(memory_space=pl.ANY)],
        out_specs=pl.BlockSpec(memory_space=pl.ANY),
        scratch_shapes=[pltpu.SemaphoreType.DMA],
    )(x)


def binary_pair_net_forward(node_features, adjacency_matrix, num_bbs,
                            *, materialize_copy=False):
    """Pallas equivalent of BinaryPairNet.forward.

    Returns (None, node_features), mirroring the PyTorch module which hands
    back the same tensor object.  adjacency_matrix and num_bbs are accepted
    but unused, exactly as in the reference.

    If `materialize_copy=True`, the node features are copied once with a
    single HBM->HBM DMA kernel (for callers that require a fresh buffer).
    """
    del adjacency_matrix, num_bbs  # unused by the reference forward
    # TODO(synk): BinaryPairNet.__init__ raises NotImplemented upstream ("use
    # BinaryPairReal"); there is no parameterized compute beyond this
    # identity pass-through.
    if materialize_copy:
        return (None, _materialized_copy(node_features))
    return (None, node_features)


if __name__ == "__main__":
    key = jax.random.PRNGKey(0)
    k1, k2 = jax.random.split(key)

    num_nodes = 8      # "numBBs"-sized node set
    hidden = 32        # node feature dim

    node_features = jax.random.normal(k1, (num_nodes, hidden), dtype=jnp.float32)
    adjacency = (jax.random.uniform(k2, (num_nodes, num_nodes)) > 0.5).astype(jnp.float32)
    num_bbs = jnp.int32(num_nodes)

    # Default (faithful, zero-cost) path: returns the input itself.
    edge_out, node_out = binary_pair_net_forward(node_features, adjacency, num_bbs)
    assert edge_out is None
    assert node_out is node_features

    # Kernel path: single HBM->HBM DMA copy.
    edge_out_c, node_out_c = binary_pair_net_forward(
        node_features, adjacency, num_bbs, materialize_copy=True)
    node_out_c = jax.block_until_ready(node_out_c)

    assert edge_out_c is None
    assert node_out_c.shape == node_features.shape
    assert node_out_c.dtype == node_features.dtype
    assert bool(jnp.array_equal(node_out_c, node_features))

    print("KERNEL_OK")
</pallas_src>

<mosaic_0001>
module attributes {stable_mosaic.version = 11 : i64} {
  func.func @_dma_copy_kernel(%arg0: memref<8x32xf32, #tpu.memory_space<any>>, %arg1: memref<8x32xf32, #tpu.memory_space<any>>, %arg2: memref<!tpu.dma_semaphore, #tpu.memory_space<semaphore_mem>>) attributes {dimension_semantics = [], scalar_prefetch = 0 : i64, scratch_operands = 1 : i64, tpu.core_type = #tpu.core_type<tc>} {
    tpu.enqueue_dma source(%arg0 : memref<8x32xf32, #tpu.memory_space<any>>) target(%arg1 : memref<8x32xf32, #tpu.memory_space<any>>) target_semaphore(%arg2 : memref<!tpu.dma_semaphore, #tpu.memory_space<semaphore_mem>>)
    tpu.wait_dma2 semaphore(%arg2 : memref<!tpu.dma_semaphore, #tpu.memory_space<semaphore_mem>>) src(%arg0 : memref<8x32xf32, #tpu.memory_space<any>>) dst(%arg1 : memref<8x32xf32, #tpu.memory_space<any>>)
    return
  }
}

</mosaic_0001>

<bundles_post_ra>
// kernel: tpu_custom_call.1
= control target key start
LH: loop header
LB: loop body
LE: loop exit
PB: predicated region body
PF: predicated region fallthrough
CT: control target
= control target key end

     0   :  { %s28_s6 = smov [#allocation2]   ;;  %s29_s7 = smov 131072   ;;  %s47_s0 = inlined_call_operand.hbm [shape: f32[8,32], index: 0, kind: input, shape index: {}]   ;;  %s48_s1 = inlined_call_operand.hbm [shape: f32[8,32], index: 1, kind: output, shape index: {}]  }
   0x1   :  { %s30_s8 = smov 0  }
   0x2   :  { %12 = dma.general %s47_s0, 128, %s48_s1, %s28_s6, %s29_s7, [#allocation4], %s30_s8, 0  }
   0x3   :  { %26 = dma.done.wait [#allocation2], 128 }
   0x4   :  { %27 = vsyncadd [#allocation2], 4294967168 }
   0x5   :  { %16 = vsyncmov [#allocation2] }
   0x8   :  { %s17_s13 = vpop.sfrf %16 }
   0x9   :  { %p22_p0 = scmp.ne.s32.totalorder %s17_s13, 0 }
   0xb   :  { %21 = shalt.err (%p22_p0)  }

</bundles_post_ra>
